<compile_context>
chip_gen: v7x
topology: tpu7x:2x2x1
jax: 0.10.0
libtpu: 0.0.40
codegen_flags: <defaults>
</compile_context>

<pallas_src>
import numpy as np
import jax
import jax.numpy as jnp
from jax import lax
from jax.experimental import pallas as pl
from jax.experimental.pallas import tpu as pltpu


# ----------------------------------------------------------------------------- kernel ----
def _upsample_fused_kernel(x_ref, x1_ref, wup_ref, sel_ref, w1_ref, w2_ref,
                           bup_ref, b1_ref, b2_ref, o_ref):
    # x_ref : (1, H,  W*C1)   decoder feature, planar, bf16
    # x1_ref: (1, Ho, Wo*C2)  encoder skip feature, planar, bf16
    # wup   : (2*W*C1, 2*Wo*C1)  polyphase ConvTranspose weights (BN scale folded), bf16
    # sel   : (Ho, Ho)           0/1 even/odd row interleave matrix, f32
    # w1    : (3*Wo*(C1+C2), Wo*MID) banded conv1 weights (BN folded), bf16
    # w2    : (3*Wo*MID, Wo*CO)      banded conv2 weights (BN folded), bf16
    # bup/b1/b2: (1, lanes) planar biases, f32
    # o_ref : (1, Ho, Wo*CO) f32  (lane-dense: Wo*CO == 128)
    f32 = jnp.float32
    bf16 = jnp.bfloat16

    def leaky(v):
        return jnp.where(v > 0, v, 0.2 * v)

    def rowctx(a):
        # rows (h-1, h, h+1) side by side along lanes -> (rows, 3*lanes); OOB rows are zero
        zrow = jnp.zeros((1, a.shape[1]), a.dtype)
        dn = jnp.concatenate([zrow, a[:-1, :]], axis=0)   # row h-1
        up = jnp.concatenate([a[1:, :], zrow], axis=0)    # row h+1
        return jnp.concatenate([dn, a, up], axis=1)

    x = x_ref[0]                                          # (H, W*C1)   bf16
    x1 = x1_ref[0]                                        # (Ho, Wo*C2) bf16

    # --- ConvTranspose2d(k=3, s=2, p=0) + BN + LeakyReLU (polyphase, one MXU push) ---
    zrow = jnp.zeros((1, x.shape[1]), x.dtype)
    x_prev = jnp.concatenate([zrow, x[:-1, :]], axis=0)   # x[r-1]
    xctx = jnp.concatenate([x, x_prev], axis=1)           # (H, 2*W*C1)
    yp = jnp.dot(xctx, wup_ref[...], preferred_element_type=f32)     # (H, 2*Wo*C1) f32
    half = yp.shape[1] // 2
    stacked = jnp.concatenate([yp[:, :half], yp[:, half:]], axis=0)  # (Ho, Wo*C1)
    y = jnp.dot(sel_ref[...], stacked, preferred_element_type=f32)   # interleave rows
    y = leaky(y + bup_ref[...]).astype(bf16)              # (Ho, Wo*C1)

    # --- conv3x3(pad=1) over cat([y, x1], ch) + BN + LeakyReLU (one MXU push) ---
    ctx1 = jnp.concatenate([rowctx(y), rowctx(x1)], axis=1)          # (Ho, 3*Wo*(C1+C2))
    h = jnp.dot(ctx1, w1_ref[...], preferred_element_type=f32)       # (Ho, Wo*MID)
    h = leaky(h + b1_ref[...]).astype(bf16)

    # --- conv3x3(pad=1) + BN + LeakyReLU (one MXU push) ---
    ctx2 = rowctx(h)                                                 # (Ho, 3*Wo*MID)
    o = jnp.dot(ctx2, w2_ref[...], preferred_element_type=f32)       # (Ho, Wo*CO)
    o = leaky(o + b2_ref[...])
    o_ref[0] = o.astype(o_ref.dtype)                                 # lane-dense store


# --------------------------------------------------------------------- weight building ----
def build_fused_weights(params, H, W):
    """Build the banded/planar matrices consumed by the fused kernel (BN scale folded)."""
    Ho, Wo = 2 * H, 2 * W
    wt = np.asarray(params['wt'], np.float32)            # (C1, C1, 3, 3)  ConvT (Cin,Cout,kh,kw)
    bt = np.asarray(params['bt'], np.float32)
    up_scale = np.asarray(params['up_scale'], np.float32)
    up_shift = np.asarray(params['up_shift'], np.float32)
    c1_w = np.asarray(params['c1_w'], np.float32)        # (3, 3, CAT, MID) HWIO
    c1_scale = np.asarray(params['c1_scale'], np.float32)
    c1_shift = np.asarray(params['c1_shift'], np.float32)
    c2_w = np.asarray(params['c2_w'], np.float32)        # (3, 3, MID, CO) HWIO
    c2_scale = np.asarray(params['c2_scale'], np.float32)
    c2_shift = np.asarray(params['c2_shift'], np.float32)

    C1 = wt.shape[0]
    CAT, MID = c1_w.shape[2], c1_w.shape[3]
    CO = c2_w.shape[3]
    C2 = CAT - C1

    # ConvTranspose, polyphase rows: xctx row r = [x[r] | x[r-1]] (planar),
    # output lanes = [even row 2r planar | odd row 2r+1 planar].
    wup = np.zeros((2 * W * C1, 2 * Wo * C1), np.float32)
    for s in range(2):                    # s=0 -> x[r], s=1 -> x[r-1]
        ky_even = 0 if s == 0 else 2
        for j in range(W):
            for w in range(Wo):
                kx = w - 2 * j
                if 0 <= kx <= 2:
                    r0 = s * W * C1 + j * C1
                    wup[r0:r0 + C1, w * C1:(w + 1) * C1] = wt[:, :, ky_even, kx]
                    if s == 0:            # odd rows use ky=1, source row r only
                        wup[r0:r0 + C1, Wo * C1 + w * C1:Wo * C1 + (w + 1) * C1] = wt[:, :, 1, kx]
    wup *= np.tile(up_scale, 2 * Wo)[None, :]
    bup = np.tile(bt * up_scale + up_shift, Wo)[None, :]

    # 0/1 row-interleave matrix: stacked = [even rows ; odd rows] -> natural order
    sel = np.zeros((Ho, Ho), np.float32)
    for r in range(H):
        sel[2 * r, r] = 1.0
        sel[2 * r + 1, H + r] = 1.0

    # conv1 (3x3, pad=1) over cat([y, x1]) as a banded row-context matmul
    w1 = np.zeros((3 * Wo * C1 + 3 * Wo * C2, Wo * MID), np.float32)
    base_x1 = 3 * Wo * C1
    for t in range(3):                    # kh
        for j in range(Wo):
            for w in range(Wo):
                kw = j - w + 1
                if 0 <= kw <= 2:
                    w1[t * Wo * C1 + j * C1: t * Wo * C1 + (j + 1) * C1,
                       w * MID:(w + 1) * MID] = c1_w[t, kw, 0:C1, :]
                    w1[base_x1 + t * Wo * C2 + j * C2: base_x1 + t * Wo * C2 + (j + 1) * C2,
                       w * MID:(w + 1) * MID] = c1_w[t, kw, C1:CAT, :]
    w1 *= np.tile(c1_scale, Wo)[None, :]
    b1 = np.tile(c1_shift, Wo)[None, :]

    # conv2 (3x3, pad=1)
    w2 = np.zeros((3 * Wo * MID, Wo * CO), np.float32)
    for t in range(3):
        for j in range(Wo):
            for w in range(Wo):
                kw = j - w + 1
                if 0 <= kw <= 2:
                    w2[t * Wo * MID + j * MID: t * Wo * MID + (j + 1) * MID,
                       w * CO:(w + 1) * CO] = c2_w[t, kw, :, :]
    w2 *= np.tile(c2_scale, Wo)[None, :]
    b2 = np.tile(c2_shift, Wo)[None, :]

    bf = jnp.bfloat16
    return dict(wup=jnp.asarray(wup, bf), sel=jnp.asarray(sel, jnp.float32),
                w1=jnp.asarray(w1, bf), w2=jnp.asarray(w2, bf),
                bup=jnp.asarray(bup, jnp.float32), b1=jnp.asarray(b1, jnp.float32),
                b2=jnp.asarray(b2, jnp.float32))


# --------------------------------------------------------------------------- wrapper ----
def upsample_forward(params, x, x1):
    """Upsample.forward (aggregate='cat', upsampling='learnable', bn=relu=True). NHWC."""
    N, H, W, C1 = x.shape
    N1, Ho, Wo, C2 = x1.shape
    assert N1 == N and Ho == 2 * H and Wo == 2 * W
    CO = params['c2_w'].shape[-1]
    fw = build_fused_weights(params, H, W)

    xp = x.astype(jnp.bfloat16).reshape(N, H, W * C1)          # planar inputs
    x1p = x1.astype(jnp.bfloat16).reshape(N, Ho, Wo * C2)

    out2d = pl.pallas_call(
        _upsample_fused_kernel,
        out_shape=jax.ShapeDtypeStruct((N, Ho, Wo * CO), jnp.float32),
        grid=(N,),
        in_specs=[
            pl.BlockSpec((1, H, W * C1), lambda n: (n, 0, 0)),
            pl.BlockSpec((1, Ho, Wo * C2), lambda n: (n, 0, 0)),
            pl.BlockSpec(fw['wup'].shape, lambda n: (0, 0)),
            pl.BlockSpec(fw['sel'].shape, lambda n: (0, 0)),
            pl.BlockSpec(fw['w1'].shape, lambda n: (0, 0)),
            pl.BlockSpec(fw['w2'].shape, lambda n: (0, 0)),
            pl.BlockSpec(fw['bup'].shape, lambda n: (0, 0)),
            pl.BlockSpec(fw['b1'].shape, lambda n: (0, 0)),
            pl.BlockSpec(fw['b2'].shape, lambda n: (0, 0)),
        ],
        out_specs=pl.BlockSpec((1, Ho, Wo * CO), lambda n: (n, 0, 0)),
        compiler_params=pltpu.CompilerParams(
            dimension_semantics=("parallel",),
            vmem_limit_bytes=32 * 1024 * 1024),
    )(xp, x1p, fw['wup'], fw['sel'], fw['w1'], fw['w2'], fw['bup'], fw['b1'], fw['b2'])
    return out2d.reshape(N, Ho, Wo, CO)


# ------------------------------------------------------------------- pure JAX reference ----
def upsample_forward_ref(params, x, x1):
    """f32 reference (ConvT as dilated conv with flipped kernel; standard convs; eval BN)."""
    def leaky(v):
        return jnp.where(v > 0, v, 0.2 * v)

    N, H, W, C1 = x.shape
    x = x.astype(jnp.float32)
    x1 = x1.astype(jnp.float32)
    wt = params['wt'].astype(jnp.float32)                       # (Cin, Cout, kh, kw)
    up_w = jnp.flip(wt, axis=(2, 3)).transpose(2, 3, 0, 1)      # HWIO, flipped

    xd = jnp.zeros((N, 2 * H - 1, 2 * W - 1, C1), jnp.float32).at[:, ::2, ::2, :].set(x)
    xdp = jnp.pad(xd, ((0, 0), (2, 2), (2, 2), (0, 0)))
    y = lax.conv_general_dilated(xdp, up_w, (1, 1), 'VALID',
                                 dimension_numbers=('NHWC', 'HWIO', 'NHWC'))
    y = y + params['bt'][None, None, None, :]
    y = leaky(y * params['up_scale'] + params['up_shift'])

    Ho, Wo = x1.shape[1], x1.shape[2]
    y = y[:, :Ho, :Wo, :]                                       # top-left crop (see TODO)
    z = jnp.concatenate([y, x1], axis=-1)

    def conv_bn_lrelu(a, w_hwio, scale, shift):
        a = jnp.pad(a, ((0, 0), (1, 1), (1, 1), (0, 0)))
        o = lax.conv_general_dilated(a, w_hwio.astype(jnp.float32), (1, 1), 'VALID',
                                     dimension_numbers=('NHWC', 'HWIO', 'NHWC'))
        return leaky(o * scale + shift)

    h = conv_bn_lrelu(z, params['c1_w'], params['c1_scale'], params['c1_shift'])
    return conv_bn_lrelu(h, params['c2_w'], params['c2_scale'], params['c2_shift'])


# ----------------------------------------------------------------------------- params ----
def init_params(key, ch_in1, ch_in2, ch_out):
    cat = ch_in1 + ch_in2
    mid = cat // 2
    ks = jax.random.split(key, 16)

    def bn(k0, k1, k2, k3, c):
        gamma = jax.random.uniform(k0, (c,), jnp.float32, 0.5, 1.5)
        beta = 0.1 * jax.random.normal(k1, (c,), jnp.float32)
        mean = 0.1 * jax.random.normal(k2, (c,), jnp.float32)
        var = jax.random.uniform(k3, (c,), jnp.float32, 0.5, 1.5)
        scale = gamma / jnp.sqrt(var + 1e-5)
        shift = beta - mean * scale
        return scale, shift

    wt = 0.1 * jax.random.normal(ks[0], (ch_in1, ch_in1, 3, 3), jnp.float32)   # ConvT (Cin,Cout,k,k)
    bt = 0.1 * jax.random.normal(ks[1], (ch_in1,), jnp.float32)
    up_scale, up_shift = bn(ks[2], ks[3], ks[4], ks[5], ch_in1)

    w1 = 0.1 * jax.random.normal(ks[6], (mid, cat, 3, 3), jnp.float32)         # torch OIHW
    c1_w = w1.transpose(2, 3, 1, 0)                                            # HWIO
    c1_scale, c1_shift = bn(ks[7], ks[8], ks[9], ks[10], mid)

    w2 = 0.1 * jax.random.normal(ks[11], (ch_out, mid, 3, 3), jnp.float32)
    c2_w = w2.transpose(2, 3, 1, 0)
    c2_scale, c2_shift = bn(ks[12], ks[13], ks[14], ks[15], ch_out)

    return dict(wt=wt, bt=bt, up_scale=up_scale, up_shift=up_shift,
                c1_w=c1_w, c1_scale=c1_scale, c1_shift=c1_shift,
                c2_w=c2_w, c2_scale=c2_scale, c2_shift=c2_shift)


# ------------------------------------------------------------------------------- main ----
if __name__ == "__main__":
    key = jax.random.PRNGKey(0)
    k_x, k_x1, k_p = jax.random.split(key, 3)

    ch_in1, ch_in2, ch_out = 4, 4, 8
    N, H, W = 2, 8, 8              # decoder feature x
    Ho, Wo = 2 * H, 2 * W          # encoder skip feature x1 (2x spatial)

    x = jax.random.normal(k_x, (N, H, W, ch_in1), jnp.float32)
    x1 = jax.random.normal(k_x1, (N, Ho, Wo, ch_in2), jnp.float32)
    params = init_params(k_p, ch_in1, ch_in2, ch_out)

    # quantize activations once so the bf16 kernel and the f32 reference share inputs
    x_q = x.astype(jnp.bfloat16).astype(jnp.float32)
    x1_q = x1.astype(jnp.bfloat16).astype(jnp.float32)

    out = upsample_forward(params, x_q, x1_q)
    out = jax.block_until_ready(out)

    ref = upsample_forward_ref(params, x_q, x1_q)
    ref = jax.block_until_ready(ref)

    assert out.shape == (N, Ho, Wo, ch_out), out.shape
    max_err = float(jnp.max(jnp.abs(out - ref)))
    assert jnp.allclose(out, ref, atol=3e-2, rtol=3e-2), max_err
    print("KERNEL_OK")
</pallas_src>

<mosaic_0001>
module attributes {stable_mosaic.version = 11 : i64} {
  func.func @_upsample_fused_kernel(%arg0: i32, %arg1: memref<1x8x32xbf16, #tpu.memory_space<vmem>>, %arg2: memref<1x16x64xbf16, #tpu.memory_space<vmem>>, %arg3: memref<64x128xbf16, #tpu.memory_space<vmem>>, %arg4: memref<16x16xf32, #tpu.memory_space<vmem>>, %arg5: memref<384x64xbf16, #tpu.memory_space<vmem>>, %arg6: memref<192x128xbf16, #tpu.memory_space<vmem>>, %arg7: memref<1x64xf32, #tpu.memory_space<vmem>>, %arg8: memref<1x64xf32, #tpu.memory_space<vmem>>, %arg9: memref<1x128xf32, #tpu.memory_space<vmem>>, %arg10: memref<1x16x128xf32, #tpu.memory_space<vmem>>) attributes {dimension_semantics = [#tpu.dimension_semantics<parallel>], iteration_bounds = array<i64: 2>, scalar_prefetch = 0 : i64, scratch_operands = 0 : i64, tpu.core_type = #tpu.core_type<tc>, window_params = [{transform_indices = @transform_0, window_bounds = array<i64: 1, 8, 32>}, {transform_indices = @transform_1, window_bounds = array<i64: 1, 16, 64>}, {pipeline_mode = #tpu.pipeline_mode<synchronous>, transform_indices = @transform_2, window_bounds = array<i64: 64, 128>}, {pipeline_mode = #tpu.pipeline_mode<synchronous>, transform_indices = @transform_3, window_bounds = array<i64: 16, 16>}, {pipeline_mode = #tpu.pipeline_mode<synchronous>, transform_indices = @transform_4, window_bounds = array<i64: 384, 64>}, {pipeline_mode = #tpu.pipeline_mode<synchronous>, transform_indices = @transform_5, window_bounds = array<i64: 192, 128>}, {pipeline_mode = #tpu.pipeline_mode<synchronous>, transform_indices = @transform_6, window_bounds = array<i64: 1, 64>}, {pipeline_mode = #tpu.pipeline_mode<synchronous>, transform_indices = @transform_7, window_bounds = array<i64: 1, 64>}, {pipeline_mode = #tpu.pipeline_mode<synchronous>, transform_indices = @transform_8, window_bounds = array<i64: 1, 128>}, {transform_indices = @transform_9, window_bounds = array<i64: 1, 16, 128>}]} {
    %c0 = arith.constant 0 : index
    %c0_0 = arith.constant 0 : index
    %c0_1 = arith.constant 0 : index
    %0 = vector.load %arg1[%c0, %c0_0, %c0_1] : memref<1x8x32xbf16, #tpu.memory_space<vmem>>, vector<1x8x32xbf16>
    %1 = vector.shape_cast %0 : vector<1x8x32xbf16> to vector<8x32xbf16>
    %c0_2 = arith.constant 0 : index
    %c0_3 = arith.constant 0 : index
    %c0_4 = arith.constant 0 : index
    %2 = vector.load %arg2[%c0_2, %c0_3, %c0_4] : memref<1x16x64xbf16, #tpu.memory_space<vmem>>, vector<1x16x64xbf16>
    %3 = vector.shape_cast %2 : vector<1x16x64xbf16> to vector<16x64xbf16>
    %cst = arith.constant 0.000000e+00 : bf16
    %4 = vector.broadcast %cst : bf16 to vector<1x32xbf16>
    %5 = vector.extract_strided_slice %1 {offsets = [0, 0], sizes = [7, 32], strides = [1, 1]} : vector<8x32xbf16> to vector<7x32xbf16>
    %6 = tpu.concatenate %4, %5 in 0 : vector<1x32xbf16>, vector<7x32xbf16> -> vector<8x32xbf16>
    %7 = tpu.concatenate %1, %6 in 1 : vector<8x32xbf16>, vector<8x32xbf16> -> vector<8x64xbf16>
    %c0_5 = arith.constant 0 : index
    %c0_6 = arith.constant 0 : index
    %8 = vector.load %arg3[%c0_5, %c0_6] : memref<64x128xbf16, #tpu.memory_space<vmem>>, vector<64x128xbf16>
    %cst_7 = arith.constant dense<0.000000e+00> : vector<8x128xf32>
    %9 = tpu.matmul %7, %8, %cst_7 {dimension_numbers = #tpu.dot_dimension_numbers<[1], [0], [0], [1], [0, 0, 1, 1], [], []>} : vector<8x64xbf16>, vector<64x128xbf16>, vector<8x128xf32> -> vector<8x128xf32>
    %10 = vector.extract_strided_slice %9 {offsets = [0, 0], sizes = [8, 64], strides = [1, 1]} : vector<8x128xf32> to vector<8x64xf32>
    %11 = vector.extract_strided_slice %9 {offsets = [0, 64], sizes = [8, 64], strides = [1, 1]} : vector<8x128xf32> to vector<8x64xf32>
    %12 = tpu.concatenate %10, %11 in 0 : vector<8x64xf32>, vector<8x64xf32> -> vector<16x64xf32>
    %c0_8 = arith.constant 0 : index
    %c0_9 = arith.constant 0 : index
    %13 = vector.load %arg4[%c0_8, %c0_9] : memref<16x16xf32, #tpu.memory_space<vmem>>, vector<16x16xf32>
    %cst_10 = arith.constant dense<0.000000e+00> : vector<16x64xf32>
    %14 = tpu.matmul %13, %12, %cst_10 {dimension_numbers = #tpu.dot_dimension_numbers<[1], [0], [0], [1], [0, 0, 1, 1], [], []>} : vector<16x16xf32>, vector<16x64xf32>, vector<16x64xf32> -> vector<16x64xf32>
    %c0_11 = arith.constant 0 : index
    %c0_12 = arith.constant 0 : index
    %15 = vector.load %arg7[%c0_11, %c0_12] : memref<1x64xf32, #tpu.memory_space<vmem>>, vector<1x64xf32>
    %16 = vector.broadcast %15 : vector<1x64xf32> to vector<16x64xf32>
    %17 = arith.addf %14, %16 : vector<16x64xf32>
    %cst_13 = arith.constant 0.000000e+00 : f32
    %18 = vector.broadcast %cst_13 : f32 to vector<16x64xf32>
    %19 = arith.cmpf ogt, %17, %18 : vector<16x64xf32>
    %cst_14 = arith.constant 2.000000e-01 : f32
    %20 = vector.broadcast %cst_14 : f32 to vector<16x64xf32>
    %21 = arith.mulf %20, %17 : vector<16x64xf32>
    %22 = arith.select %19, %17, %21 : vector<16x64xi1>, vector<16x64xf32>
    %23 = arith.truncf %22 : vector<16x64xf32> to vector<16x64xbf16>
    %cst_15 = arith.constant 0.000000e+00 : bf16
    %24 = vector.broadcast %cst_15 : bf16 to vector<1x64xbf16>
    %25 = vector.extract_strided_slice %23 {offsets = [0, 0], sizes = [15, 64], strides = [1, 1]} : vector<16x64xbf16> to vector<15x64xbf16>
    %26 = tpu.concatenate %24, %25 in 0 : vector<1x64xbf16>, vector<15x64xbf16> -> vector<16x64xbf16>
    %27 = vector.extract_strided_slice %23 {offsets = [1, 0], sizes = [15, 64], strides = [1, 1]} : vector<16x64xbf16> to vector<15x64xbf16>
    %28 = tpu.concatenate %27, %24 in 0 : vector<15x64xbf16>, vector<1x64xbf16> -> vector<16x64xbf16>
    %29 = tpu.concatenate %26, %23, %28 in 1 : vector<16x64xbf16>, vector<16x64xbf16>, vector<16x64xbf16> -> vector<16x192xbf16>
    %cst_16 = arith.constant 0.000000e+00 : bf16
    %30 = vector.broadcast %cst_16 : bf16 to vector<1x64xbf16>
    %31 = vector.extract_strided_slice %3 {offsets = [0, 0], sizes = [15, 64], strides = [1, 1]} : vector<16x64xbf16> to vector<15x64xbf16>
    %32 = tpu.concatenate %30, %31 in 0 : vector<1x64xbf16>, vector<15x64xbf16> -> vector<16x64xbf16>
    %33 = vector.extract_strided_slice %3 {offsets = [1, 0], sizes = [15, 64], strides = [1, 1]} : vector<16x64xbf16> to vector<15x64xbf16>
    %34 = tpu.concatenate %33, %30 in 0 : vector<15x64xbf16>, vector<1x64xbf16> -> vector<16x64xbf16>
    %35 = tpu.concatenate %32, %3, %34 in 1 : vector<16x64xbf16>, vector<16x64xbf16>, vector<16x64xbf16> -> vector<16x192xbf16>
    %36 = tpu.concatenate %29, %35 in 1 : vector<16x192xbf16>, vector<16x192xbf16> -> vector<16x384xbf16>
    %c0_17 = arith.constant 0 : index
    %c0_18 = arith.constant 0 : index
    %37 = vector.load %arg5[%c0_17, %c0_18] : memref<384x64xbf16, #tpu.memory_space<vmem>>, vector<384x64xbf16>
    %cst_19 = arith.constant dense<0.000000e+00> : vector<16x64xf32>
    %38 = tpu.matmul %36, %37, %cst_19 {dimension_numbers = #tpu.dot_dimension_numbers<[1], [0], [0], [1], [0, 0, 1, 1], [], []>} : vector<16x384xbf16>, vector<384x64xbf16>, vector<16x64xf32> -> vector<16x64xf32>
    %c0_20 = arith.constant 0 : index
    %c0_21 = arith.constant 0 : index
    %39 = vector.load %arg8[%c0_20, %c0_21] : memref<1x64xf32, #tpu.memory_space<vmem>>, vector<1x64xf32>
    %40 = vector.broadcast %39 : vector<1x64xf32> to vector<16x64xf32>
    %41 = arith.addf %38, %40 : vector<16x64xf32>
    %cst_22 = arith.constant 0.000000e+00 : f32
    %42 = vector.broadcast %cst_22 : f32 to vector<16x64xf32>
    %43 = arith.cmpf ogt, %41, %42 : vector<16x64xf32>
    %cst_23 = arith.constant 2.000000e-01 : f32
    %44 = vector.broadcast %cst_23 : f32 to vector<16x64xf32>
    %45 = arith.mulf %44, %41 : vector<16x64xf32>
    %46 = arith.select %43, %41, %45 : vector<16x64xi1>, vector<16x64xf32>
    %47 = arith.truncf %46 : vector<16x64xf32> to vector<16x64xbf16>
    %cst_24 = arith.constant 0.000000e+00 : bf16
    %48 = vector.broadcast %cst_24 : bf16 to vector<1x64xbf16>
    %49 = vector.extract_strided_slice %47 {offsets = [0, 0], sizes = [15, 64], strides = [1, 1]} : vector<16x64xbf16> to vector<15x64xbf16>
    %50 = tpu.concatenate %48, %49 in 0 : vector<1x64xbf16>, vector<15x64xbf16> -> vector<16x64xbf16>
    %51 = vector.extract_strided_slice %47 {offsets = [1, 0], sizes = [15, 64], strides = [1, 1]} : vector<16x64xbf16> to vector<15x64xbf16>
    %52 = tpu.concatenate %51, %48 in 0 : vector<15x64xbf16>, vector<1x64xbf16> -> vector<16x64xbf16>
    %53 = tpu.concatenate %50, %47, %52 in 1 : vector<16x64xbf16>, vector<16x64xbf16>, vector<16x64xbf16> -> vector<16x192xbf16>
    %c0_25 = arith.constant 0 : index
    %c0_26 = arith.constant 0 : index
    %54 = vector.load %arg6[%c0_25, %c0_26] : memref<192x128xbf16, #tpu.memory_space<vmem>>, vector<192x128xbf16>
    %cst_27 = arith.constant dense<0.000000e+00> : vector<16x128xf32>
    %55 = tpu.matmul %53, %54, %cst_27 {dimension_numbers = #tpu.dot_dimension_numbers<[1], [0], [0], [1], [0, 0, 1, 1], [], []>} : vector<16x192xbf16>, vector<192x128xbf16>, vector<16x128xf32> -> vector<16x128xf32>
    %c0_28 = arith.constant 0 : index
    %c0_29 = arith.constant 0 : index
    %56 = vector.load %arg9[%c0_28, %c0_29] : memref<1x128xf32, #tpu.memory_space<vmem>>, vector<1x128xf32>
    %57 = vector.broadcast %56 : vector<1x128xf32> to vector<16x128xf32>
    %58 = arith.addf %55, %57 : vector<16x128xf32>
    %cst_30 = arith.constant 0.000000e+00 : f32
    %59 = vector.broadcast %cst_30 : f32 to vector<16x128xf32>
    %60 = arith.cmpf ogt, %58, %59 : vector<16x128xf32>
    %cst_31 = arith.constant 2.000000e-01 : f32
    %61 = vector.broadcast %cst_31 : f32 to vector<16x128xf32>
    %62 = arith.mulf %61, %58 : vector<16x128xf32>
    %63 = arith.select %60, %58, %62 : vector<16x128xi1>, vector<16x128xf32>
    %c0_32 = arith.constant 0 : index
    %c0_33 = arith.constant 0 : index
    %c0_34 = arith.constant 0 : index
    %64 = vector.load %arg10[%c0_32, %c0_33, %c0_34] : memref<1x16x128xf32, #tpu.memory_space<vmem>>, vector<1x16x128xf32>
    %65 = vector.shape_cast %64 : vector<1x16x128xf32> to vector<16x128xf32>
    %66 = vector.shape_cast %63 : vector<16x128xf32> to vector<1x16x128xf32>
    tpu.vector_store %arg10[%c0_32, %c0_33, %c0_34], %66 {strides = array<i32>} : memref<1x16x128xf32, #tpu.memory_space<vmem>>, vector<1x16x128xf32>,
    return
  }
  func.func @transform_0(%arg0: i32) -> (i32, i32, i32) {
    %c0_i32 = arith.constant 0 : i32
    %c0_i32_0 = arith.constant 0 : i32
    %c0_i32_1 = arith.constant 0 : i32
    return %arg0, %c0_i32, %c0_i32_0 : i32, i32, i32
  }
  func.func @transform_1(%arg0: i32) -> (i32, i32, i32) {
    %c0_i32 = arith.constant 0 : i32
    %c0_i32_0 = arith.constant 0 : i32
    %c0_i32_1 = arith.constant 0 : i32
    return %arg0, %c0_i32, %c0_i32_0 : i32, i32, i32
  }
  func.func @transform_2(%arg0: i32) -> (i32, i32) {
    %c0_i32 = arith.constant 0 : i32
    %c0_i32_0 = arith.constant 0 : i32
    %c0_i32_1 = arith.constant 0 : i32
    return %c0_i32, %c0_i32_0 : i32, i32
  }
  func.func @transform_3(%arg0: i32) -> (i32, i32) {
    %c0_i32 = arith.constant 0 : i32
    %c0_i32_0 = arith.constant 0 : i32
    %c0_i32_1 = arith.constant 0 : i32
    return %c0_i32, %c0_i32_0 : i32, i32
  }
  func.func @transform_4(%arg0: i32) -> (i32, i32) {
    %c0_i32 = arith.constant 0 : i32
    %c0_i32_0 = arith.constant 0 : i32
    %c0_i32_1 = arith.constant 0 : i32
    return %c0_i32, %c0_i32_0 : i32, i32
  }
  func.func @transform_5(%arg0: i32) -> (i32, i32) {
    %c0_i32 = arith.constant 0 : i32
    %c0_i32_0 = arith.constant 0 : i32
    %c0_i32_1 = arith.constant 0 : i32
    return %c0_i32, %c0_i32_0 : i32, i32
  }
  func.func @transform_6(%arg0: i32) -> (i32, i32) {
    %c0_i32 = arith.constant 0 : i32
    %c0_i32_0 = arith.constant 0 : i32
    %c0_i32_1 = arith.constant 0 : i32
    return %c0_i32, %c0_i32_0 : i32, i32
  }
  func.func @transform_7(%arg0: i32) -> (i32, i32) {
    %c0_i32 = arith.constant 0 : i32
    %c0_i32_0 = arith.constant 0 : i32
    %c0_i32_1 = arith.constant 0 : i32
    return %c0_i32, %c0_i32_0 : i32, i32
  }
  func.func @transform_8(%arg0: i32) -> (i32, i32) {
    %c0_i32 = arith.constant 0 : i32
    %c0_i32_0 = arith.constant 0 : i32
    %c0_i32_1 = arith.constant 0 : i32
    return %c0_i32, %c0_i32_0 : i32, i32
  }
  func.func @transform_9(%arg0: i32) -> (i32, i32, i32) {
    %c0_i32 = arith.constant 0 : i32
    %c0_i32_0 = arith.constant 0 : i32
    %c0_i32_1 = arith.constant 0 : i32
    return %arg0, %c0_i32, %c0_i32_0 : i32, i32, i32
  }
}

</mosaic_0001>

<bundles_post_ra>
// kernel: tpu_custom_call.1
= control target key start
LH: loop header
LB: loop body
LE: loop exit
PB: predicated region body
PF: predicated region fallthrough
CT: control target
= control target key end

     0   :  { %14 = vsyncpa [#allocation3], 0  ;;  %s1817_s0 = inlined_call_operand.vmem [shape: bf16[2,8,32], index: 0, kind: input, shape index: {}]   ;;  %s1818_s1 = inlined_call_operand.vmem [shape: bf16[2,16,64], index: 1, kind: input, shape index: {}]   ;;  %s1819_s2 = inlined_call_operand.vmem [shape: bf16[64,128], index: 2, kind: input, shape index: {}]   ;;  %s1820_s3 = inlined_call_operand.vmem [shape: f32[16,16], index: 3, kind: input, shape index: {}]   ;;  %s1821_s4 = inlined_call_operand.vmem [shape: bf16[384,64], index: 4, kind: input, shape index: {}]   ;;  %s1822_s5 = inlined_call_operand.vmem [shape: bf16[192,128], index: 5, kind: input, shape index: {}]   ;;  %s1823_s6 = inlined_call_operand.vmem [shape: f32[1,64], index: 6, kind: input, shape index: {}]   ;;  %s1824_s7 = inlined_call_operand.vmem [shape: f32[1,64], index: 7, kind: input, shape index: {}]   ;;  %s1825_s8 = inlined_call_operand.vmem [shape: f32[1,128], index: 8, kind: input, shape index: {}]   ;;  %s1826_s9 = inlined_call_operand.hbm [shape: f32[2,16,128], index: 9, kind: output, shape index: {}]  }
   0x1   :  { %16 = vsyncpa [#allocation3 + $0x1], 0  ;;  %s1518_s30 = smov 0   ;;  %s1520_s10 = smov 0  }
   0x2   :  { %s1522_s11 = smov 0   ;;  %s1524_s12 = smov 0  }
   0x3 LB: > { %s1539_s13 = sadd.s32 4294967295, %s1458_s12   ;;  %s1161_s14 = sadd.s32 4294967294, %s1458_s12   ;;  %s1458_s12 = sphi %s1524_s12, %s1836_s12   ;;  %s1454_s11 = sphi %s1522_s11, %s1835_s11   ;;  %s1450_s10 = sphi %s1520_s10, %s1834_s10   ;;  %s1446_s30 = sphi %s1518_s30, %s1833_s30  }
   0x4   : > { %s1543_s15 = sadd.s32 1, %s1458_s12   ;;  %s228_s16 = sadd.s32 1, %s1454_s11 }
   0x5   : > { %s225_s17 = ssub.s32 %s1458_s12, %s1543_s15  ;;  %p238_p0 = scmp.ne.s32.totalorder %s1454_s11, %s1450_s10 }
   0x6   : > { %p226_p1 = scmp.eq.s32.totalorder %s225_s17, 0  ;;  %p239_p2 = scmp.eq.s32.totalorder %s1539_s13, 1 }
   0x7   : > { %p244_p3 = scmp.ne.s32.totalorder %s1450_s10, %s1446_s30  ;;  %p245_p4 = scmp.eq.s32.totalorder %s1161_s14, 1 }
   0x8   : > { %s1554_s18 = scalar_select %p226_p1, %s1454_s11, %s228_s16  }
   0x9   : > { %p1556_p5 = por %p239_p2, %p238_p0  ;;  %p1560_p6 = por %p245_p4, %p244_p3 }
   0xa   : > { %p1164_p7 = scmp.ge.s32.totalorder %s1458_s12, 1  ;;  %p299_p8 = scmp.lt.s32.totalorder %s1458_s12, 3 }
   0xc   : > { %p300_p9 = pnand %p1164_p7, %p299_p8 }
   0xd   : > { %p339_p10 = scmp.lt.s32.totalorder (!%p300_p9), %s1539_s13, 1  ;;  %vm364_vm0 = vsmask.f32 (!%p300_p9), 256  ;;  %v1460_v0 = vmov (!%p300_p9), 0.0   ;;  %v1355_v1 = vld [vmem:[%s1819_s2] sm:$0xff] (!%p300_p9)   ;;  %v1356_v2 = vld [vmem:[%s1819_s2 + $0x8] sm:$0xff] (!%p300_p9)  }
   0xe   : > { %303 = sbr.rel (%p300_p9) target bundleno = 1396 (0x574), region = 56  ;;  %1265 = vmatprep.subr.bf16.mxu0 (!%p300_p9), %v1460_v0  ;;  %vm1461_vm1 = vmmov (!%p300_p9), 0   ;;  %vm363_vm2 = vcmask (!%p300_p9), 1040384   ;;  %v1357_v4 = vld [vmem:[%s1819_s2 + $0x10] sm:$0xff] (!%p300_p9)   ;;  %v1358_v10 = vld [vmem:[%s1819_s2 + $0x18] sm:$0xff] (!%p300_p9)   ;;  %s1462_s23 = smov (!%p300_p9), 32  }
   0xf   : > { %1266 = vmatpush3.bf16.msra.mxu0 (!%p300_p9), %v1355_v1  ;;  %1273 = vmatprep.mubr.msk.bf16.mxu0 (!%p300_p9), %vm1461_vm1, %v1460_v0  ;;  %vm1588_vm3 = vmand (!%p300_p9), %vm363_vm2, %vm364_vm0  ;;  %vm370_vm4 = vcmask (!%p300_p9), 261120   ;;  %vm406_vm5 = vcmask (!%p300_p9), 523264   ;;  %s1463_s28 = smov (!%p300_p9), 64   ;;  %v453_v16 = vld [vmem:[%s1820_s3] sm:$0xff] (!%p300_p9)  ;;  %vm462_vm6 = vcmask (!%p300_p9), 130048   ;;  %v454_v30 = vld [vmem:[%s1820_s3 + $0x8] sm:$0xff] (!%p300_p9) }
  0x10   : > { %1267 = vmatprep.subr.bf16.mxu0 (!%p300_p9), %v1460_v0  ;;  %vm563_vm7 = vcmask (!%p300_p9), 1047552   ;;  %vm564_vm8 = vsmask.f32 (!%p300_p9), 7424  ;;  %v1360_v35 = vld [vmem:[%s1821_s4 + $0x40] sm:$0xff] (!%p300_p9)   ;;  %v1363_v38 = vld [vmem:[%s1821_s4 + $0x48] sm:$0xff] (!%p300_p9)   ;;  %v1366_v41 = vld [vmem:[%s1821_s4 + $0x50] sm:$0xff] (!%p300_p9)  }
  0x11   : > { %vm1621_vm9 = vmand (!%p300_p9), %vm563_vm7, %vm564_vm8  ;;  %v1361_v36 = vld [vmem:[%s1821_s4] sm:$0xff] (!%p300_p9)   ;;  %1234 = vmatprep.subr.bf16.mxu1 (!%p300_p9), %v1360_v35  ;;  %v1365_v39 = vld [vmem:[%s1821_s4 + $0x88] sm:$0xff] (!%p300_p9)   ;;  %s1224_s25 = sshll.u32 (!%p300_p9), %s1539_s13, 8 }
  0x12   : > { %v1362_v37 = vld [vmem:[%s1821_s4 + $0x80] sm:$0xff] (!%p300_p9)   ;;  %1235 = vmatpush3.bf16.msra.mxu1 (!%p300_p9), %v1361_v36  ;;  %v1364_v40 = vld [vmem:[%s1821_s4 + $0x8] sm:$0xff] (!%p300_p9)   ;;  %v1368_v42 = vld [vmem:[%s1821_s4 + $0x90] sm:$0xff] (!%p300_p9)  }
  0x13   : > { %1268 = vmatpush3.bf16.msra.mxu0 (!%p300_p9), %v1356_v2  ;;  %1236 = vmatprep.subr.bf16.mxu1 (!%p300_p9), %v1363_v38  ;;  %v1367_v43 = vld [vmem:[%s1821_s4 + $0x10] sm:$0xff] (!%p300_p9)   ;;  %v1369_v44 = vld [vmem:[%s1821_s4 + $0x58] sm:$0xff] (!%p300_p9)   ;;  %v1372_v47 = vld [vmem:[%s1821_s4 + $0x60] sm:$0xff] (!%p300_p9)  }
  0x14   : > { %1269 = vmatprep.subr.bf16.mxu0 (!%p300_p9), %v1460_v0  ;;  %v1371_v45 = vld [vmem:[%s1821_s4 + $0x98] sm:$0xff] (!%p300_p9)   ;;  %v1374_v48 = vld [vmem:[%s1821_s4 + $0xa0] sm:$0xff] (!%p300_p9)   ;;  %v1375_v50 = vld [vmem:[%s1821_s4 + $0x68] sm:$0xff] (!%p300_p9)  }
  0x15   : > { %s1569_s21 = scalar_select %p339_p10, %s1539_s13, 1  ;;  %v1370_v46 = vld [vmem:[%s1821_s4 + $0x18] sm:$0xff]   ;;  %v1373_v49 = vld [vmem:[%s1821_s4 + $0x20] sm:$0xff]   ;;  %v1377_v51 = vld [vmem:[%s1821_s4 + $0xa8] sm:$0xff]  }
  0x16   : > { %1237 = vmatpush3.bf16.msra.mxu1 %v1364_v40  ;;  %v1376_v52 = vld [vmem:[%s1821_s4 + $0x28] sm:$0xff]   ;;  %v1378_v53 = vld [vmem:[%s1821_s4 + $0x70] sm:$0xff]   ;;  %v1381_v56 = vld [vmem:[%s1821_s4 + $0x78] sm:$0xff]  }
  0x17   : > { %s1166_s24 = sshll.u32 %s1569_s21, 2  ;;  %1270 = vmatpush3.bf16.msra.mxu0 %v1357_v4  ;;  %1238 = vmatprep.subr.bf16.mxu1 %v1366_v41  ;;  %v1380_v54 = vld [vmem:[%s1821_s4 + $0xb0] sm:$0xff]   ;;  %v1383_v57 = vld [vmem:[%s1821_s4 + $0xb8] sm:$0xff]   ;;  %v1175_v62 = vld [vmem:[%s1823_s6] ss:$0 sm:$0xff] }
  0x18   : > { %s342_s29 = scalar_lea.vmem %s1817_s0, %s1166_s24  ;;  %1271 = vmatprep.subr.bf16.mxu0 %v1460_v0  ;;  %s1223_s24 = sshll.u32 %s1569_s21, 3  ;;  %v1379_v55 = vld [vmem:[%s1821_s4 + $0x30] sm:$0xff]   ;;  %v1382_v58 = vld [vmem:[%s1821_s4 + $0x38] sm:$0xff]   ;;  %v1393_v35 = vld [vmem:[%s1822_s5 + $0x48] sm:$0xff]  }
  0x19   : > { %v349_v3 = vld [vmem:[%s342_s29] sm:$0xf]  ;;  %s347_s27 = scalar_lea.vmem %s1818_s1, %s1223_s24  ;;  %v1394_v36 = vld [vmem:[%s1822_s5 + $0x50] sm:$0xff]   ;;  %s1774_s29 = scalar_lea.hbm %s1826_s9, %s1224_s25 }
  0x1a   : > { %v1169_v5 = vcombine.low %v349_v3, %v349_v3  ;;  %v1359_v15 = vld [vmem:[%s347_s27] sm:$0xff]   ;;  %1239 = vmatpush3.bf16.msra.mxu1 %v1367_v43  ;;  %s1465_s21 = smov [#allocation2]  }
  0x1b   : > { %1272 = vmatpush3.bf16.msra.mxu0 %v1358_v10  ;;  %592 = vrot.lane.b32.xlu1 %v1359_v15, %s1463_s28  ;;  %v580_v21 = vshrl.u32 %v1359_v15, 16  ;;  %v583_v23 = vshll.u32 %v1359_v15, 16  ;;  %v1179_v40 = vld [vmem:[%s1824_s7] ss:$0 sm:$0xff] }
  0x1c   : > { %v356_v6 = vshrl.u32 %v1169_v5, 16  ;;  %v359_v7 = vshll.u32 %v1169_v5, 16  ;;  %1240 = vmatprep.subr.bf16.mxu1 %v1369_v44 }
  0x1d   : > { %v582_v22 = vrot.slane %v580_v21, 7  ;;  %v588_v31 = vrot.slane %v583_v23, 1 }
  0x1e   : > { %v358_v9 = vrot.slane %v356_v6, 7  ;;  %1241 = vmatpush3.bf16.msra.mxu1 %v1370_v46 }
  0x1f   : > { %v585_v24 = vor.u32 %v583_v23, %v582_v22  ;;  %v589_v32 = vor.u32 %v588_v31, %v580_v21  ;;  %1242 = vmatprep.subr.bf16.mxu1 %v1372_v47  ;;  %v1390_v31 = vld [vmem:[%s1822_s5 + $0x30] sm:$0xff]  }
  0x20   : > { %v361_v11 = vor.u32 %v359_v7, %v358_v9 }
  0x21   : > { %v587_v25 = vsel %vm1588_vm3, 0, %v585_v24  ;;  %v591_v34 = vsel %vm1621_vm9, %v589_v32, 0  ;;  %v1384_v24 = vld [vmem:[%s1822_s5] sm:$0xff]   ;;  %v1391_v32 = vld [vmem:[%s1822_s5 + $0x38] sm:$0xff]  }
  0x22   : > { %v366_v12 = vsel %vm1588_vm3, 0, %v361_v11  ;;  %1243 = vmatpush3.bf16.msra.mxu1 %v1373_v49 }
  0x23   : > { %368 = vrot.lane.b32.xlu0 %v366_v12, %s1462_s23  ;;  %1244 = vmatprep.subr.bf16.mxu1 %v1375_v50 }
  0x26   : > { %1245 = vmatpush3.bf16.msra.mxu1 %v1376_v52 }
  0x27   : > { %1246 = vmatprep.subr.bf16.mxu1 %v1378_v53 }
  0x2a   : > { %1247 = vmatpush3.bf16.msra.mxu1 %v1379_v55 }
  0x2b   : > { %1248 = vmatprep.subr.bf16.mxu1 %v1381_v56 }
  0x2e   : > { %1249 = vmatpush3.bf16.msra.mxu1 %v1382_v58 }
  0x8d   : > { %v593_v26 = vpop.permute.xlu1 %592 }
  0x8e   : > { %v596_v27 = vsel %vm406_vm5, %v587_v25, %v593_v26  ;;  %v1464_v25 = vmov 0   ;;  %v1385_v26 = vld [vmem:[%s1822_s5 + $0x8] sm:$0xff]  }
  0x8f   : > { %599 = vrot.lane.b32.xlu1 %v596_v27, %s1463_s28  ;;  %1024 = vmatprep.subr.bf16.mxu1 %v1464_v25  ;;  %v1386_v27 = vld [vmem:[%s1822_s5 + $0x10] sm:$0xff]  }
  0x93   : > { %601 = vrot.lane.b32.xlu1 %v591_v34, %s1463_s28  ;;  %v1392_v34 = vld [vmem:[%s1822_s5 + $0x40] sm:$0xff]  }
  0x95   : > { %v369_v13 = vpop.permute.xlu0 %368 }
  0x96   : > { %v373_v14 = vsel %vm370_vm4, %v349_v3, %v369_v13 }
  0x97   : > { %1274 = vmatmul.mubr.msk.bf16.vlgmr.msra.gmra.mrb[0].mxu0 %vm406_vm5, %v373_v14 }
  0x98   : > { %1281 = vmatprep.mubr.msk.f32.mxu0 %vm462_vm6, %v453_v16 }
 0x101   : > { %v600_v59 = vpop.permute.xlu1 %599 }
 0x105   : > { %v602_v60 = vpop.permute.xlu1 %601 }
 0x106   : > { %v604_v61 = vsel %vm406_vm5, %v600_v59, %v602_v60 }
 0x16a   : > { %v443_v17 = vpop.f32.mrb[0].mxu0 }
 0x16b   : > { %450 = vrot.lane.b32.xlu0 %v443_v17, %s1463_s28  ;;  %v1275_v18 = vpop.f32.mrb[1].mxu0 }
 0x16c   : > { %v446_v19 = vpop.f32.mrb[2].mxu0 }
 0x16d   : > { %v1276_v20 = vpop.f32.mrb[3].mxu0 }
 0x1dd   : > { %v451_v28 = vpop.permute.xlu0 %450 }
 0x1de   : > { %v1304_v29 = vpack.c.bf16 %v451_v28, %v443_v17  ;;  %v1387_v28 = vld [vmem:[%s1822_s5 + $0x18] sm:$0xff]  }
 0x1e0   : > { %1305 = vmatprep.subr.bf16.mxu0 %v1304_v29 }
 0x1e1   : > { %1307 = vmatpush3.bf16.msra.mxu0 %v1304_v29  ;;  %v1388_v29 = vld [vmem:[%s1822_s5 + $0x20] sm:$0xff]  }
 0x1e2   : > { %1284 = vmatprep.subr.bf16.mxu0 %v1460_v0 }
 0x1e4   : > { %1282 = vmatmul.mubr.msk.f32.vlgmr.msra.gmra.mrb[4].mxu0 %vm462_vm6, %v454_v30  ;;  %v1389_v30 = vld [vmem:[%s1822_s5 + $0x28] sm:$0xff]  }
 0x1e5   : > { %1300 = vmatprep.mubr.msk.bf16.mxu0 %vm1461_vm1, %v1460_v0  ;;  %1285 = vmatpush3.bf16.msra.mxu0 %v1362_v37  ;;  %v1395_v37 = vld [vmem:[%s1822_s5 + $0x58] sm:$0xff]  }
 0x1e6   : > { %1286 = vmatprep.subr.bf16.mxu0 %v1460_v0 }
 0x1e9   : > { %1287 = vmatpush3.bf16.msra.mxu0 %v1365_v39 }
 0x1ea   : > { %1288 = vmatprep.subr.bf16.mxu0 %v1460_v0 }
 0x1ed   : > { %1289 = vmatpush3.bf16.msra.mxu0 %v1368_v42 }
 0x1ee   : > { %1290 = vmatprep.subr.bf16.mxu0 %v1460_v0 }
 0x1f1   : > { %1291 = vmatpush3.bf16.msra.mxu0 %v1371_v45 }
 0x1f2   : > { %1292 = vmatprep.subr.bf16.mxu0 %v1460_v0 }
 0x1f5   : > { %1293 = vmatpush3.bf16.msra.mxu0 %v1374_v48 }
 0x1f6   : > { %1294 = vmatprep.subr.bf16.mxu0 %v1460_v0 }
 0x1f9   : > { %1295 = vmatpush3.bf16.msra.mxu0 %v1377_v51 }
 0x1fa   : > { %1296 = vmatprep.subr.bf16.mxu0 %v1460_v0 }
 0x1fd   : > { %1297 = vmatpush3.bf16.msra.mxu0 %v1380_v54 }
 0x1fe   : > { %1298 = vmatprep.subr.bf16.mxu0 %v1460_v0 }
 0x201   : > { %1299 = vmatpush3.bf16.msra.mxu0 %v1383_v57 }
 0x204   : > { %1301 = vmatmul.mubr.bf16.vlgmr.msra.gmra.mrb[8].mxu0 %v604_v61 }
 0x2b7   : > { %v1283_v63 = vpop.f32.mrb[4].mxu0 }
 0x2b8   : > { %v541_v1 = vadd.f32 %v1283_v63, %v1175_v62  ;;  %v535_v2 = vpop.f32.mrb[5].mxu0 }
 0x2b9   : > { %v536_v3 = vadd.f32 %v1175_v62, %v535_v2 }
 0x2ba   : > { %vm545_vm10 = vcmp.gt.f32.partialorder %v541_v1, 0.0  ;;  %v547_v4 = vmul.f32 0.2, %v541_v1 }
 0x2bb   : > { %vm544_vm11 = vcmp.gt.f32.partialorder %v536_v3, 0.0  ;;  %v546_v0 = vmul.f32 0.2, %v536_v3 }
 0x2bc   : > { %v549_v5 = vsel %vm545_vm10, %v541_v1, %v547_v4  ;;  %v1204_v1 = vld [vmem:[%s1825_s8] ss:$0 sm:$0xff] }
 0x2bd   : > { %v548_v6 = vsel %vm544_vm11, %v536_v3, %v546_v0 }
 0x2be   : > { %v550_v7 = vpack.c.bf16 %v549_v5, %v548_v6 }
 0x2c0   : > { %568 = vrot.lane.b32.xlu0 %v550_v7, %s1463_s28  ;;  %v552_v9 = vshrl.u32 %v550_v7, 16  ;;  %v555_v10 = vshll.u32 %v550_v7, 16 }
 0x2c2   : > { %v560_v11 = vrot.slane %v555_v10, 1  ;;  %v554_v12 = vrot.slane %v552_v9, 7 }
 0x2c4   : > { %v561_v13 = vor.u32 %v560_v11, %v552_v9  ;;  %v557_v14 = vor.u32 %v555_v10, %v554_v12 }
 0x2c6   : > { %v566_v15 = vsel %vm1621_vm9, %v561_v13, 0  ;;  %v559_v18 = vsel %vm1588_vm3, 0, %v557_v14 }
 0x2c7   : > { %v608_v16 = vsel %vm406_vm5, %v566_v15, %v600_v59 }
 0x2c8   : > { %841 = vmatprep.mubr.bf16.mxu1 %v608_v16 }
 0x2d7   : > { %v884_v20 = vpop.f32.mrb[8].mxu0 }
 0x2d8   : > { %v1302_v21 = vpop.f32.mrb[9].mxu0 }
 0x2d9   : > { %v887_v22 = vpop.f32.mrb[10].mxu0 }
 0x2da   : > { %v1303_v23 = vpop.f32.mrb[11].mxu0 }
 0x332   : > { %v569_v17 = vpop.permute.xlu0 %568 }
 0x333   : > { %v572_v19 = vsel %vm406_vm5, %v559_v18, %v569_v17 }
 0x334   : > { %842 = vmatmul.mubr.bf16.vlgmr.msra.gmra.mrb[0].mxu1 %v572_v19 }
 0x335   : > { %1025 = vmatpush1.bf16.msra.mxu1 %v1384_v24 }
 0x336   : > { %1026 = vmatprep.subr.bf16.mxu1 %v1464_v25 }
 0x339   : > { %1027 = vmatpush1.bf16.msra.mxu1 %v1385_v26 }
 0x33a   : > { %1028 = vmatprep.subr.bf16.mxu1 %v1464_v25 }
 0x33d   : > { %1029 = vmatpush1.bf16.msra.mxu1 %v1386_v27 }
 0x33e   : > { %1030 = vmatprep.subr.bf16.mxu1 %v1464_v25 }
 0x341   : > { %1031 = vmatpush1.bf16.msra.mxu1 %v1387_v28 }
 0x342   : > { %1032 = vmatprep.subr.bf16.mxu1 %v1464_v25 }
 0x345   : > { %1033 = vmatpush1.bf16.msra.mxu1 %v1388_v29 }
 0x346   : > { %1034 = vmatprep.subr.bf16.mxu1 %v1464_v25 }
 0x349   : > { %1035 = vmatpush1.bf16.msra.mxu1 %v1389_v30 }
 0x34a   : > { %1036 = vmatprep.subr.bf16.mxu1 %v1464_v25 }
 0x34d   : > { %1037 = vmatpush1.bf16.msra.mxu1 %v1390_v31 }
 0x34e   : > { %1038 = vmatprep.subr.bf16.mxu1 %v1464_v25 }
 0x351   : > { %1039 = vmatpush1.bf16.msra.mxu1 %v1391_v32 }
 0x352   : > { %1040 = vmatprep.subr.bf16.mxu1 %v1464_v25 }
 0x355   : > { %1041 = vmatpush1.bf16.msra.mxu1 %v1392_v34 }
 0x356   : > { %1042 = vmatprep.subr.bf16.mxu1 %v1464_v25 }
 0x359   : > { %1043 = vmatpush1.bf16.msra.mxu1 %v1393_v35 }
 0x35a   : > { %1044 = vmatprep.subr.bf16.mxu1 %v1464_v25 }
 0x35d   : > { %1045 = vmatpush1.bf16.msra.mxu1 %v1394_v36 }
 0x35e   : > { %1046 = vmatprep.subr.bf16.mxu1 %v1464_v25 }
 0x361   : > { %1047 = vmatpush1.bf16.msra.mxu1 %v1395_v37 }
 0x407   : > { %v1250_v38 = vpop.f32.mrb[0].mxu1 }
 0x408   : > { %v1251_v39 = vpop.f32.mrb[1].mxu1 }
 0x409   : > { %v1252_v41 = vadd.f32 %v1251_v39, %v1250_v38  ;;  %v1253_v42 = vpop.f32.mrb[2].mxu1 }
 0x40a   : > { %v1254_v43 = vpop.f32.mrb[3].mxu1 }
 0x40b   : > { %v844_v44 = vadd.f32 %v1252_v41, %v1179_v40  ;;  %v1255_v45 = vadd.f32 %v1254_v43, %v1253_v42 }
 0x40d   : > { %v885_v46 = vadd.f32 %v884_v20, %v844_v44  ;;  %v847_v47 = vadd.f32 %v1255_v45, %v1179_v40 }
 0x40f   : > { %v893_v48 = vmul.f32 0.2, %v885_v46  ;;  %v888_v49 = vadd.f32 %v887_v22, %v847_v47  ;;  %vm891_vm12 = vcmp.gt.f32.partialorder %v885_v46, 0.0 }
 0x411   : > { %vm892_vm13 = vcmp.gt.f32.partialorder %v888_v49, 0.0  ;;  %v894_v50 = vmul.f32 0.2, %v888_v49  ;;  %v895_v51 = vsel %vm891_vm12, %v885_v46, %v893_v48 }
 0x413   : > { %v896_v52 = vsel %vm892_vm13, %v888_v49, %v894_v50 }
 0x414   : > { %v897_v53 = vpack.c.bf16 %v896_v52, %v895_v51 }
 0x416   : > { %912 = vrot.lane.b32.xlu0 %v897_v53, %s1463_s28  ;;  %v902_v54 = vshll.u32 %v897_v53, 16  ;;  %v899_v55 = vshrl.u32 %v897_v53, 16  ;;  %s336_s28 = sand.u32 1, %s1450_s10  }
 0x417   : > { %s1165_s16 = sshll.u32 %s336_s28, 4  ;;  %s1776_s13 = scalar_lea.sflag [#allocation3], %s336_s28 }
 0x418   : > { %v907_v56 = vrot.slane %v902_v54, 1  ;;  %v901_v57 = vrot.slane %v899_v55, 7  ;;  %s338_s23 = scalar_lea.vmem [#allocation2], %s1165_s16  ;;  %s1400_s16 = sshll.u32 %s1465_s21, 4  ;;  %s1401_s16 = int_to_ptr.vmem [resolvable:$false] %s1400_s16 }
 0x419   : > { %s1087_s24 = sshll.u32 %s338_s23, 4  ;;  %s1402_s17 = scalar_lea.vmem %s1401_s16, 512  ;;  %s1769_s24 = int_to_ptr.vmem [resolvable:$true] %s1087_s24 }
 0x41a   : > { %v908_v58 = vor.u32 %v907_v56, %v899_v55  ;;  %v904_v59 = vor.u32 %v902_v54, %v901_v57  ;;  %s1396_s14 = scalar_lea.vmem %s1769_s24, 256  ;;  %p1403_p0 = scmp.lt.s32.totalorder %s1769_s24, %s1401_s16 }
 0x41b   : > { %p1397_p11 = scmp.ne.s32.totalorder %s1769_s24, %s1396_s14  ;;  %p1404_p1 = scmp.lt.s32.totalorder %s1402_s17, %s1396_s14 }
 0x41c   : > { %v910_v60 = vsel %vm1621_vm9, %v908_v58, 0  ;;  %v906_v62 = vsel %vm1588_vm3, 0, %v904_v59 }
 0x41d   : > { %1217 = vmatprep.mubr.msk.bf16.mxu1 %vm406_vm5, %v910_v60  ;;  %p1398_p12 = pnand %p1397_p11, %p1556_p5  ;;  %p1405_p2 = por %p1404_p1, %p1403_p0 }
 0x41f   : > { %p1399_p13 = pneg %p1398_p12 }
 0x421   : > { %p1406_p3 = pnand %p1405_p2, %p1399_p13 }
 0x488   : > { %v913_v61 = vpop.permute.xlu0 %912 }
 0x489   : > { %v916_v63 = vsel %vm406_vm5, %v906_v62, %v913_v61 }
 0x48a   : > { %1057 = vmatmul.mubr.bf16.vlgmr.msra.gmra.mrb[4].mxu1 %v916_v63 }
 0x55d   : > { %v1058_v2 = vpop.f32.mrb[4].mxu1 }
 0x55e   : > { %v1059_v3 = vadd.f32 %v1204_v1, %v1058_v2  ;;  %v1060_v33 = vpop.f32.mrb[5].mxu1 }
 0x55f   : > { %v1061_v4 = vpop.f32.mrb[6].mxu1 }
 0x560   : > { %vm1065_vm14 = vcmp.gt.f32.partialorder %v1059_v3, 0.0  ;;  %v1067_v8 = vmul.f32 0.2, %v1059_v3  ;;  %v1062_v0 = vadd.f32 %v1204_v1, %v1061_v4  ;;  %v1063_v5 = vpop.f32.mrb[7].mxu1 }
 0x562   : > { %v1069_v6 = vsel %vm1065_vm14, %v1059_v3, %v1067_v8  ;;  %vm1066_vm15 = vcmp.gt.f32.partialorder %v1062_v0, 0.0  ;;  %v1068_v7 = vmul.f32 0.2, %v1062_v0 }
 0x563   : > { %1071 = vst [vmem:[%s338_s23] sm:$0xff] %v1069_v6 }
 0x564   : > { %v1070_v9 = vsel %vm1066_vm15, %v1062_v0, %v1068_v7 }
 0x565   : > { %1072 = vst [vmem:[%s338_s23 + $0x8] sm:$0xff] %v1070_v9 }
 0x566   : > { %1409 = shalt.err (!%p1406_p3)
}
 0x567   : > { %s1410_s28 = scalar_lea.hbm %s1774_s29, 256  ;;  %s1414_s25 = scalar_lea.hbm %s1826_s9, 512 }
 0x568   : > { %p1411_p4 = scmp.ne.s32.totalorder %s1774_s29, %s1410_s28  ;;  %p1415_p9 = scmp.lt.u32.totalorder %s1774_s29, %s1826_s9 }
 0x569   : > { %p1416_p10 = scmp.lt.u32.totalorder %s1414_s25, %s1410_s28  ;;  %p1418_p12 = scmp.lt.u32.totalorder %s1410_s28, %s1774_s29 }
 0x56a   : > { %p1412_p7 = pnand %p1411_p4, %p1556_p5 }
 0x56b   : > { %p1417_p11 = por %p1416_p10, %p1415_p9 }
 0x56c   : > { %p1413_p8 = pneg %p1412_p7 }
 0x56d   : > { %p1419_p13 = por %p1418_p12, %p1417_p11 }
 0x56f   : > { %p1420_p0 = pnand %p1419_p13, %p1413_p8 }
 0x571   : > { %1423 = shalt.err (!%p1420_p0)
}
 0x572   : > { %s1466_s14 = smov 128   ;;  %s1467_s21 = smov 8  }
 0x573   : > { %1308 = dma.vmem_to_hbm [thread:$0]  (%p1556_p5), %s1769_s24, 256, %s1774_s29, %s1776_s13, %s1466_s14, %s1466_s14, %s1467_s21  }
 0x574 PF: > { %p1314_p1 = scmp.ge.s32.totalorder %s1458_s12, 2  ;;  %s1102_s16 = sand.u32 1, %s1446_s30  }
 0x575   : > { %s1103_s17 = scalar_lea.sflag [#allocation3], %s1102_s16 }
 0x576   : > { %p1311_p2 = pnand %p1314_p1, %p1560_p6 }
 0x578   : > { %1441 = dma.done.wait (!%p1311_p2), %s1103_s17, 256  }
 0x579   : > { %1443 = vsyncadd (!%p1311_p2), %s1103_s17, 4294967040  ;;  %p19_p3 = scmp.ge.s32.totalorder %s1543_s15, 4   ;;  %s1833_s30 = smov %s1450_s10 }
 0x57a   : > { %s1834_s10 = smov %s1454_s11  ;;  %s1835_s11 = smov %s1554_s18 }
 0x57b   : > { %s1836_s12 = smov %s1543_s15  ;;  %21 = sbr.rel (!%p19_p3) target bundleno = 3 (0x3), region = 94 }
 0x582   :  { %1108 = vsyncpa [#allocation3], 1 }
 0x583   :  { %1110 = vsyncpa [#allocation3 + $0x1], 1 }

</bundles_post_ra>
